<compile_context>
chip_gen: v7x
topology: tpu7x:2x2x1
jax: 0.10.0
libtpu: 0.0.40
codegen_flags: <defaults>
</compile_context>

<pallas_src>
import functools
import math

import jax
import jax.numpy as jnp
from jax.experimental import pallas as pl
from jax.experimental.pallas import tpu as pltpu

LANES = 128
MAX_TILE_ROWS = 1024      # (1024, 128) f32 block = 512 KiB
NPARTS = 2                # parallel split across TensorCores (v7x); harmless on 1-TC chips


def _round_up(x, m):
    return ((x + m - 1) // m) * m


def _cdiv(a, b):
    return -(-a // b)


def _kl_sum_kernel(mu_ref, sigma_ref, out_ref, acc_ref, *,
                   n_elems, tile_rows, blocks_per_part, mu_p, inv_2sp2):
    """Accumulates sum_i [ inv_2sp2*(sigma_i^2 + (mu_i - mu_p)^2) - log(sigma_i) ].

    The constant  log(sigma_p) - 0.5  and the division by n are applied in the
    wrapper (hoisted out of the per-element loop).
    """
    p = pl.program_id(0)          # parallel part (TensorCore split)
    k = pl.program_id(1)          # serial reduction step within the part

    @pl.when(k == 0)
    def _():
        acc_ref[...] = jnp.zeros_like(acc_ref)

    mu = mu_ref[...].astype(jnp.float32)
    sigma = sigma_ref[...].astype(jnp.float32)

    dm = mu - mu_p
    term = (sigma * sigma + dm * dm) * inv_2sp2 - jnp.log(sigma)

    # Mask out lane padding, block overhang past the array end and (for odd
    # block counts) logically out-of-range blocks of the second part.
    block_start = (p * blocks_per_part + k) * (tile_rows * LANES)
    row_ids = jax.lax.broadcasted_iota(jnp.int32, (tile_rows, LANES), 0)
    lane_ids = jax.lax.broadcasted_iota(jnp.int32, (tile_rows, LANES), 1)
    local_idx = row_ids * LANES + lane_ids
    remaining = n_elems - block_start            # scalar, may be <= 0
    acc_ref[...] += jnp.where(local_idx < remaining, term, 0.0)

    @pl.when(k == pl.num_programs(1) - 1)
    def _():
        # Single cross-lane reduce, only on the last step of this part.
        out_ref[...] = jnp.broadcast_to(jnp.sum(acc_ref[...]), out_ref.shape)


def kl_div_pallas(mu_q, sigma_q, mu_p, sigma_p):
    """KL( N(mu_q, sigma_q) || N(mu_p, sigma_p) ).mean() — exact BaseLayer_.kl_div."""
    mu_p = float(mu_p)
    sigma_p = float(sigma_p)

    n = int(mu_q.size)
    assert n > 0, "kl_div on an empty tensor"

    # Keep f32/bf16 params in their native dtype for the DMA (bf16 halves HBM
    # traffic); anything else is upcast in the wrapper.
    def _prep(x):
        if x.dtype not in (jnp.float32, jnp.bfloat16):
            x = x.astype(jnp.float32)
        return jnp.reshape(x, (-1,))

    mu_flat = _prep(mu_q)
    sigma_flat = _prep(sigma_q)

    # Pad at most 127 lane elements; when n % 128 == 0 the reshape below is
    # layout-preserving (no HBM copy).  Padded / overhang elements are masked
    # in-kernel, so pad values are irrelevant (1.0 for sigma avoids log(0)).
    rem = (-n) % LANES
    if rem:
        mu_flat = jnp.pad(mu_flat, (0, rem))
        sigma_flat = jnp.pad(sigma_flat, (0, rem), constant_values=1.0)
    rows = (n + rem) // LANES
    mu_2d = mu_flat.reshape(rows, LANES)
    sigma_2d = sigma_flat.reshape(rows, LANES)

    # Block rows: big enough to amortize per-step overhead, a multiple of 16 so
    # both f32 and bf16 tilings are legal, and sized so the work splits across
    # the NPARTS parallel axis when there is enough of it.
    tile_rows = max(16, min(MAX_TILE_ROWS, _round_up(_cdiv(rows, NPARTS), 16)))
    nblocks = _cdiv(rows, tile_rows)
    blocks_per_part = _cdiv(nblocks, NPARTS)
    last_block = nblocks - 1

    def in_index_map(p, k):
        # Clamp so the DMA window always starts inside the array; logically
        # out-of-range blocks contribute 0 via the in-kernel mask anyway.
        return (jnp.minimum(p * blocks_per_part + k, last_block), 0)

    kernel = functools.partial(
        _kl_sum_kernel,
        n_elems=n,
        tile_rows=tile_rows,
        blocks_per_part=blocks_per_part,
        mu_p=mu_p,
        inv_2sp2=1.0 / (2.0 * sigma_p * sigma_p),
    )

    out = pl.pallas_call(
        kernel,
        out_shape=jax.ShapeDtypeStruct((NPARTS, 8, LANES), jnp.float32),
        grid_spec=pltpu.PrefetchScalarGridSpec(
            num_scalar_prefetch=0,
            grid=(NPARTS, blocks_per_part),
            in_specs=[
                pl.BlockSpec((tile_rows, LANES), in_index_map),
                pl.BlockSpec((tile_rows, LANES), in_index_map),
            ],
            out_specs=pl.BlockSpec((1, 8, LANES), lambda p, k: (p, 0, 0)),
            scratch_shapes=[pltpu.VMEM((tile_rows, LANES), jnp.float32)],
        ),
        compiler_params=pltpu.CompilerParams(
            dimension_semantics=("parallel", "arbitrary")),
    )(mu_2d, sigma_2d)

    kl_sum = out[:, 0, 0].sum()                 # combine per-core partials
    return kl_sum / n + (math.log(sigma_p) - 0.5)


class BaseLayerPallas:
    """JAX/Pallas mirror of BaseLayer_."""

    def __init__(self):
        self.deterministic = True

    def __call__(self, x):
        if not self.deterministic:
            return self._forward_uncertain(x)
        return self._forward_det(x)

    # TODO(synk): _forward_uncertain / _forward_det are abstract in the
    # PyTorch module (implemented only by subclasses); nothing to translate.
    def _forward_uncertain(self, x):
        raise NotImplementedError

    def _forward_det(self, x):
        raise NotImplementedError

    def kl_div(self, mu_q, sigma_q, mu_p, sigma_p):
        return kl_div_pallas(mu_q, sigma_q, mu_p, sigma_p)


def _kl_div_ref(mu_q, sigma_q, mu_p, sigma_p):
    mu_q = mu_q.astype(jnp.float32)
    sigma_q = sigma_q.astype(jnp.float32)
    kl = (jnp.log(sigma_p) - jnp.log(sigma_q)
          + (sigma_q ** 2 + (mu_q - mu_p) ** 2) / (2.0 * sigma_p ** 2) - 0.5)
    return jnp.mean(kl)


def _make_params(key, shape, dtype):
    k_mu, k_rho = jax.random.split(key)
    mu_q = 0.1 * jax.random.normal(k_mu, shape, dtype=jnp.float32)
    rho = -3.0 + 0.1 * jax.random.normal(k_rho, shape, dtype=jnp.float32)
    sigma_q = jnp.log1p(jnp.exp(rho))           # softplus -> positive sigma
    return mu_q.astype(dtype), sigma_q.astype(dtype)


if __name__ == "__main__":
    layer = BaseLayerPallas()
    mu_p, sigma_p = 0.0, 1.0                    # standard-normal prior

    key = jax.random.PRNGKey(0)
    k1, k2 = jax.random.split(key)

    # 1) Tiny Bayesian conv weight (4, 4, 3, 3): exercises lane padding + mask.
    mu_a, sig_a = _make_params(k1, (4, 4, 3, 3), jnp.float32)
    kl_a = jax.block_until_ready(layer.kl_div(mu_a, sig_a, mu_p, sigma_p))
    ref_a = _kl_div_ref(mu_a, sig_a, jnp.float32(mu_p), jnp.float32(sigma_p))
    assert jnp.allclose(kl_a, ref_a, rtol=1e-5, atol=1e-6), (kl_a, ref_a)

    # 2) Larger conv weight (64, 64, 3, 3): multiple of 128 -> zero-copy path,
    #    both parallel parts active.
    mu_b, sig_b = _make_params(k2, (64, 64, 3, 3), jnp.float32)
    kl_b = jax.block_until_ready(layer.kl_div(mu_b, sig_b, mu_p, sigma_p))
    ref_b = _kl_div_ref(mu_b, sig_b, jnp.float32(mu_p), jnp.float32(sigma_p))
    assert jnp.allclose(kl_b, ref_b, rtol=1e-5, atol=1e-6), (kl_b, ref_b)

    # 3) Same weights stored in bf16: bf16 DMA, in-kernel upcast.
    mu_c, sig_c = mu_b.astype(jnp.bfloat16), sig_b.astype(jnp.bfloat16)
    kl_c = jax.block_until_ready(layer.kl_div(mu_c, sig_c, mu_p, sigma_p))
    ref_c = _kl_div_ref(mu_c, sig_c, jnp.float32(mu_p), jnp.float32(sigma_p))
    assert jnp.allclose(kl_c, ref_c, rtol=1e-4, atol=1e-5), (kl_c, ref_c)

    print("KERNEL_OK")
</pallas_src>

<mosaic_0001>
module attributes {stable_mosaic.version = 11 : i64} {
  func.func @_kl_sum_kernel(%arg0: i32, %arg1: i32, %arg2: memref<16x128xf32, #tpu.memory_space<vmem>>, %arg3: memref<16x128xf32, #tpu.memory_space<vmem>>, %arg4: memref<1x8x128xf32, #tpu.memory_space<vmem>>, %arg5: memref<16x128xf32, #tpu.memory_space<vmem>>) attributes {dimension_semantics = [#tpu.dimension_semantics<parallel>, #tpu.dimension_semantics<arbitrary>], iteration_bounds = array<i64: 2, 1>, scalar_prefetch = 0 : i64, scratch_operands = 1 : i64, tpu.core_type = #tpu.core_type<tc>, window_params = [{transform_indices = @transform_0, window_bounds = array<i64: 16, 128>}, {transform_indices = @transform_1, window_bounds = array<i64: 16, 128>}, {transform_indices = @transform_2, window_bounds = array<i64: 1, 8, 128>}]} {
    %c0_i32 = arith.constant 0 : i32
    %0 = arith.cmpi eq, %arg1, %c0_i32 : i32
    %1 = arith.extui %0 : i1 to i32
    %c0_i32_0 = arith.constant 0 : i32
    %2 = arith.cmpi ne, %1, %c0_i32_0 : i32
    scf.if %2 {
      %cst_12 = arith.constant 0.000000e+00 : f32
      %33 = vector.broadcast %cst_12 : f32 to vector<16x128xf32>
      %c0_13 = arith.constant 0 : index
      %c0_14 = arith.constant 0 : index
      %34 = vector.load %arg5[%c0_13, %c0_14] : memref<16x128xf32, #tpu.memory_space<vmem>>, vector<16x128xf32>
      tpu.vector_store %arg5[%c0_13, %c0_14], %33 {strides = array<i32>} : memref<16x128xf32, #tpu.memory_space<vmem>>, vector<16x128xf32>,
    } else {
    }
    %c0 = arith.constant 0 : index
    %c0_1 = arith.constant 0 : index
    %3 = vector.load %arg2[%c0, %c0_1] : memref<16x128xf32, #tpu.memory_space<vmem>>, vector<16x128xf32>
    %c0_2 = arith.constant 0 : index
    %c0_3 = arith.constant 0 : index
    %4 = vector.load %arg3[%c0_2, %c0_3] : memref<16x128xf32, #tpu.memory_space<vmem>>, vector<16x128xf32>
    %cst = arith.constant 0.000000e+00 : f32
    %5 = vector.broadcast %cst : f32 to vector<16x128xf32>
    %6 = arith.subf %3, %5 : vector<16x128xf32>
    %7 = arith.mulf %4, %4 : vector<16x128xf32>
    %8 = arith.mulf %6, %6 : vector<16x128xf32>
    %9 = arith.addf %7, %8 : vector<16x128xf32>
    %cst_4 = arith.constant 5.000000e-01 : f32
    %10 = vector.broadcast %cst_4 : f32 to vector<16x128xf32>
    %11 = arith.mulf %9, %10 : vector<16x128xf32>
    %12 = math.log %4 : vector<16x128xf32>
    %13 = arith.subf %11, %12 : vector<16x128xf32>
    %c1_i32 = arith.constant 1 : i32
    %14 = arith.muli %arg0, %c1_i32 : i32
    %15 = arith.addi %14, %arg1 : i32
    %c2048_i32 = arith.constant 2048 : i32
    %16 = arith.muli %15, %c2048_i32 : i32
    %17 = tpu.iota {dimensions = array<i32: 0>} : vector<16x128xi32>
    %18 = tpu.iota {dimensions = array<i32: 1>} : vector<16x128xi32>
    %c128_i32 = arith.constant 128 : i32
    %19 = vector.broadcast %c128_i32 : i32 to vector<16x128xi32>
    %20 = arith.muli %17, %19 : vector<16x128xi32>
    %21 = arith.addi %20, %18 : vector<16x128xi32>
    %c144_i32 = arith.constant 144 : i32
    %22 = arith.subi %c144_i32, %16 : i32
    %c0_5 = arith.constant 0 : index
    %c0_6 = arith.constant 0 : index
    %23 = vector.load %arg5[%c0_5, %c0_6] : memref<16x128xf32, #tpu.memory_space<vmem>>, vector<16x128xf32>
    %24 = vector.broadcast %22 : i32 to vector<16x128xi32>
    %25 = arith.cmpi slt, %21, %24 : vector<16x128xi32>
    %cst_7 = arith.constant 0.000000e+00 : f32
    %26 = vector.broadcast %cst_7 : f32 to vector<16x128xf32>
    %27 = arith.select %25, %13, %26 : vector<16x128xi1>, vector<16x128xf32>
    %28 = arith.addf %23, %27 : vector<16x128xf32>
    %c0_8 = arith.constant 0 : index
    %c0_9 = arith.constant 0 : index
    %29 = vector.load %arg5[%c0_8, %c0_9] : memref<16x128xf32, #tpu.memory_space<vmem>>, vector<16x128xf32>
    tpu.vector_store %arg5[%c0_8, %c0_9], %28 {strides = array<i32>} : memref<16x128xf32, #tpu.memory_space<vmem>>, vector<16x128xf32>,
    %c0_i32_10 = arith.constant 0 : i32
    %30 = arith.cmpi eq, %arg1, %c0_i32_10 : i32
    %31 = arith.extui %30 : i1 to i32
    %c0_i32_11 = arith.constant 0 : i32
    %32 = arith.cmpi ne, %31, %c0_i32_11 : i32
    scf.if %32 {
      %c0_12 = arith.constant 0 : index
      %c0_13 = arith.constant 0 : index
      %33 = vector.load %arg5[%c0_12, %c0_13] : memref<16x128xf32, #tpu.memory_space<vmem>>, vector<16x128xf32>
      %34 = vector.shape_cast %33 : vector<16x128xf32> to vector<1x16x128xf32>
      %cst_14 = arith.constant dense<0.000000e+00> : vector<1xf32>
      %35 = vector.multi_reduction <add>, %34, %cst_14 [1, 2] : vector<1x16x128xf32> to vector<1xf32>
      %36 = vector.shape_cast %35 : vector<1xf32> to vector<1x1x1xf32>
      %37 = vector.extract %36[0, 0, 0] : f32 from vector<1x1x1xf32>
      %38 = vector.broadcast %37 : f32 to vector<1x8x128xf32>
      %c0_15 = arith.constant 0 : index
      %c0_16 = arith.constant 0 : index
      %c0_17 = arith.constant 0 : index
      %39 = vector.load %arg4[%c0_15, %c0_16, %c0_17] : memref<1x8x128xf32, #tpu.memory_space<vmem>>, vector<1x8x128xf32>
      tpu.vector_store %arg4[%c0_15, %c0_16, %c0_17], %38 {strides = array<i32>} : memref<1x8x128xf32, #tpu.memory_space<vmem>>, vector<1x8x128xf32>,
    } else {
    }
    return
  }
  func.func @transform_0(%arg0: i32, %arg1: i32) -> (i32, i32) {
    %c1_i32 = arith.constant 1 : i32
    %0 = arith.muli %arg0, %c1_i32 : i32
    %1 = arith.addi %0, %arg1 : i32
    %c0_i32 = arith.constant 0 : i32
    %2 = arith.minsi %1, %c0_i32 : i32
    %c0_i32_0 = arith.constant 0 : i32
    %c0_i32_1 = arith.constant 0 : i32
    return %2, %c0_i32_0 : i32, i32
  }
  func.func @transform_1(%arg0: i32, %arg1: i32) -> (i32, i32) {
    %c1_i32 = arith.constant 1 : i32
    %0 = arith.muli %arg0, %c1_i32 : i32
    %1 = arith.addi %0, %arg1 : i32
    %c0_i32 = arith.constant 0 : i32
    %2 = arith.minsi %1, %c0_i32 : i32
    %c0_i32_0 = arith.constant 0 : i32
    %c0_i32_1 = arith.constant 0 : i32
    return %2, %c0_i32_0 : i32, i32
  }
  func.func @transform_2(%arg0: i32, %arg1: i32) -> (i32, i32, i32) {
    %c0_i32 = arith.constant 0 : i32
    %c0_i32_0 = arith.constant 0 : i32
    %c0_i32_1 = arith.constant 0 : i32
    return %arg0, %c0_i32, %c0_i32_0 : i32, i32, i32
  }
}

</mosaic_0001>

<bundles_post_ra>
// kernel: tpu_custom_call.1
= control target key start
LH: loop header
LB: loop body
LE: loop exit
PB: predicated region body
PF: predicated region fallthrough
CT: control target
= control target key end

     0   :  { %7 = vsyncpa [#allocation4], 0  ;;  %s838_s0 = inlined_call_operand.hbm [shape: f32[2,128], index: 0, kind: input, shape index: {}]   ;;  %s839_s1 = inlined_call_operand.vmem [shape: f32[2,128], index: 1, kind: input, shape index: {}]   ;;  %s840_s2 = inlined_call_operand.hbm [shape: f32[2,8,128], index: 2, kind: output, shape index: {}]  }
   0x1   :  { %9 = vsyncpa [#allocation4 + $0x1], 0 }
   0x2   :  { %10 = vsyncpa [#allocation5], 0 }
   0x3   :  { %12 = vsyncpa [#allocation5 + $0x1], 0  ;;  %s678_s9 = smov 0   ;;  %s680_s10 = smov 0  }
   0x4   :  { %s682_s11 = smov 0   ;;  %s684_s12 = smov 0  }
   0x5   :  { %s686_s13 = smov 0   ;;  %s688_s14 = smov 0  }
   0x6   :  { %s690_s15 = smov 0   ;;  %s692_s16 = smov 0  }
   0x7 LB: > { %s414_s17 = sadd.s32 4294967295, %s657_s16   ;;  %s415_s18 = sadd.s32 4294967294, %s657_s16   ;;  %s657_s16 = sphi %s692_s16, %s18_s16   ;;  %s653_s15 = sphi %s690_s15, %s850_s15   ;;  %s649_s14 = sphi %s688_s14, %s849_s14   ;;  %s645_s13 = sphi %s686_s13, %s828_s13   ;;  %s641_s12 = sphi %s684_s12, %s848_s12   ;;  %s637_s11 = sphi %s682_s11, %s847_s11   ;;  %s633_s10 = sphi %s680_s10, %s846_s10   ;;  %s629_s9 = sphi %s678_s9, %s845_s9  }
   0x8   : > { %s30_s19 = sadd.s32 1, %s653_s15  ;;  %p626_p1 = scmp.ne.s32.totalorder %s645_s13, 0 }
   0x9   : > { %p32_p0 = scmp.ge.s32.totalorder %s30_s19, 2  ;;  %p51_p2 = scmp.eq.s32.totalorder %s657_s16, 0 }
   0xa   : > { %p56_p3 = scmp.ne.s32.totalorder %s645_s13, %s641_s12  ;;  %p57_p5 = scmp.eq.s32.totalorder %s414_s17, 0 }
   0xb   : > { %s852_s19 = smov (%p32_p0, %s30_s19), 0  ;;  %p724_p4 = por %p626_p1, %p51_p2 }
   0xc   : > { %p728_p6 = por %p57_p5, %p56_p3  ;;  %s98_s22 = ssub.s32 %s653_s15, %s852_s19 }
   0xd   : > { %p99_p7 = scmp.eq.s32.totalorder %s98_s22, 0  ;;  %s101_s23 = sadd.s32 1, %s637_s11 }
   0xe   : > { %p111_p8 = scmp.ne.s32.totalorder %s637_s11, %s633_s10  ;;  %p112_p9 = scmp.eq.s32.totalorder %s414_s17, 1 }
   0xf   : > { %s736_s24 = scalar_select %p99_p7, %s637_s11, %s101_s23  }
  0x10   : > { %p117_p10 = scmp.ne.s32.totalorder %s633_s10, %s629_s9  ;;  %p118_p11 = scmp.eq.s32.totalorder %s415_s18, 1 }
  0x11   : > { %p742_p12 = por %p112_p9, %p111_p8  ;;  %p417_p0 = scmp.ge.s32.totalorder %s657_s16, 2 }
  0x12   : > { %p746_p13 = por %p118_p11, %p117_p10 }
  0x13   : > { %134 = sbr.rel (%p417_p0) target bundleno = 53 (0x35), region = 16 }
  0x1a   : > { %137 = sbr.rel (!%p724_p4) target bundleno = 53 (0x35), region = 20 }
  0x21   : > { %151 = vsyncadd [#allocation4], 224  ;;  %s659_s27 = smov [#allocation3]   ;;  %s524_s3 = scalar_lea.hbm %s838_s0, 32 }
  0x22   : > { %s156_s28 = sshll.u32 %s659_s27, 4  ;;  %p525_p1 = scmp.ne.s32.totalorder %s838_s0, %s524_s3  ;;  %s157_s28 = int_to_ptr.vmem [resolvable:$true] %s156_s28 }
  0x23   : > { %p530_p2 = scmp.lt.u32.totalorder %s524_s3, %s524_s3  ;;  %p532_p3 = scmp.lt.u32.totalorder %s524_s3, %s838_s0 }
  0x25   : > { %p533_p5 = por %p532_p3, %p530_p2 }
  0x27   : > { %p534_p7 = pnand %p533_p5, %p525_p1 }
  0x29   : > { %537 = shalt.err (!%p534_p7)
}
  0x2a   : > { %s538_s8 = scalar_lea.vmem %s157_s28, 32  ;;  %s544_s12 = scalar_lea.vmem %s157_s28, 512 }
  0x2b   : > { %p539_p4 = scmp.ne.s32.totalorder %s157_s28, %s538_s8  ;;  %p545_p8 = scmp.lt.s32.totalorder %s157_s28, %s157_s28 }
  0x2c   : > { %p546_p9 = scmp.lt.s32.totalorder %s544_s12, %s538_s8 }
  0x2e   : > { %p547_p10 = por %p546_p9, %p545_p8 }
  0x30   : > { %p548_p11 = pnand %p547_p10, %p539_p4 }
  0x32   : > { %551 = shalt.err (!%p548_p11)
}
  0x33   : > { %s660_s17 = smov 32   ;;  %s661_s18 = smov 2  }
  0x34   : > { %162 = dma.hbm_to_vmem [thread:$0]  %s838_s0, 32, %s157_s28, [#allocation4], %s660_s17, %s660_s17, %s661_s18  }
  0x35 PF: > { %p425_p1 = scmp.ge.s32.totalorder %s657_s16, 1  ;;  %p183_p2 = scmp.lt.s32.totalorder %s657_s16, 3 }
  0x37   : > { %p184_p3 = pnand %p425_p1, %p183_p2 }
  0x38   : > { %s189_s23 = sand.u32 (!%p184_p3), 1, %s645_s13  }
  0x39   : > { %187 = sbr.rel (%p184_p3) target bundleno = 314 (0x13a), region = 28  ;;  %s426_s27 = sshll.u32 (!%p184_p3), %s189_s23, 4 }
  0x3a   : > { %s190_s29 = scalar_lea.sflag (!%p184_p3), [#allocation4], %s189_s23  ;;  %s193_s30 = scalar_lea.vmem (!%p184_p3), [#allocation3], %s426_s27 }
  0x40   : > { %617 = dma.done.wait (%p728_p6), %s190_s29, 256  }
  0x41   : > { %619 = vsyncadd (%p728_p6), %s190_s29, 4294967040  ;;  %p231_p5 = scmp.lt.s32.totalorder %s649_s14, 0  ;;  %v272_v0 = vlaneseq  ;;  %v252_v2 = vld [vmem:[%s193_s30] sm:$0xff]  ;;  %v253_v3 = vld [vmem:[%s193_s30 + $0x8] sm:$0xff]  ;;  %s430_s21 = sshll.u32 %s649_s14, 11 }
  0x42   : > { %v258_v7 = vmul.f32 %v252_v2, %v252_v2  ;;  %v259_v10 = vmul.f32 %v253_v3, %v253_v3  ;;  %s281_s8 = ssub.s32 144, %s430_s21  ;;  %s221_s12 = sand.u32 1, %s633_s10  }
  0x43   : > { %s232_s28 = scalar_select %p231_p5, %s649_s14, 0  ;;  %v273_v1 = vshrl.u32 %v272_v0, 7  ;;  %v276_v11 = vand.u32 127, %v272_v0  ;;  %v284_v19 = vstv %s281_s8 }
  0x44   : > { %s427_s17 = sshll.u32 %s221_s12, 3  ;;  %s432_s22 = sshll.u32 %s649_s14, 7 }
  0x45   : > { %s428_s3 = sshll.u32 %s232_s28, 3  ;;  %v274_v8 = vadd.s32 8, %v273_v1  ;;  %v277_v12 = vmul.u32 128, %v273_v1  ;;  %s223_s18 = scalar_lea.vmem [#allocation6], %s427_s17 }
  0x46   : > { %p236_p7 = scmp.lt.s32.totalorder %s428_s3, 0  ;;  %s324_s20 = sshll.u32 %s223_s18, 4  ;;  %s782_s20 = int_to_ptr.vmem [resolvable:$true] %s324_s20 }
  0x47   : > { %v278_v14 = vmul.u32 128, %v274_v8  ;;  %v279_v16 = vadd.s32 %v277_v12, %v276_v11  ;;  %s787_s30 = scalar_lea.hbm %s840_s2, %s432_s22  ;;  %s311_s28 = scalar_lea.sflag [#allocation5], %s221_s12 }
  0x48   : > { %s854_s3 = smov (!%p236_p7, %s428_s3), 0  ;;  %s662_s14 = smov [#allocation6]  }
  0x49   : > { %s429_s4 = sshll.u32 %s854_s3, 1  ;;  %v280_v18 = vadd.s32 %v278_v14, %v276_v11  ;;  %vm285_vm0 = vcmp.lt.s32.totalorder %v279_v16, %v284_v19  ;;  %s552_s3 = scalar_lea.vmem %s782_s20, 128 }
  0x4a   : > { %s239_s7 = scalar_lea.vmem %s839_s1, %s429_s4  ;;  %p553_p6 = scmp.ne.s32.totalorder %s782_s20, %s552_s3 }
  0x4b   : > { %v254_v4 = vld [vmem:[%s239_s7] sm:$0xff]  ;;  %v255_v5 = vld [vmem:[%s239_s7 + $0x8] sm:$0xff]  ;;  %vm286_vm1 = vcmp.lt.s32.totalorder %v280_v18, %v284_v19  ;;  %s556_s4 = sshll.u32 %s662_s14, 4  ;;  %s557_s4 = int_to_ptr.vmem [resolvable:$false] %s556_s4 }
  0x4c   : > { %520 = vlog2.f32 %v254_v4  ;;  %v256_v6 = vmul.f32 %v254_v4, %v254_v4  ;;  %v257_v9 = vmul.f32 %v255_v5, %v255_v5  ;;  %p554_p4 = pnand %p553_p6, %p742_p12  ;;  %s558_s5 = scalar_lea.vmem %s557_s4, 256 }
  0x4d   : > { %522 = vlog2.f32 %v255_v5  ;;  %p559_p9 = scmp.lt.s32.totalorder %s782_s20, %s557_s4  ;;  %p560_p10 = scmp.lt.s32.totalorder %s558_s5, %s552_s3 }
  0x4e   : > { %v260_v13 = vadd.f32 %v258_v7, %v256_v6  ;;  %v261_v15 = vadd.f32 %v259_v10, %v257_v9  ;;  %p555_p8 = pneg %p554_p4 }
  0x4f   : > { %p561_p11 = por %p560_p10, %p559_p9 }
  0x50   : > { %v262_v17 = vmul.f32 0.5, %v260_v13  ;;  %v263_v21 = vmul.f32 0.5, %v261_v15 }
  0x51   : > { %p562_p1 = pnand %p561_p11, %p555_p8 }
  0x56   : > { %v521_v20 = vpop.eup %520 }
  0x57   : > { %v523_v22 = vpop.eup %522  ;;  %v265_v23 = vmul.f32 0.6931472, %v521_v20 }
  0x58   : > { %v267_v24 = vmul.f32 0.6931472, %v523_v22 }
  0x59   : > { %v268_v25 = vsub.f32 %v262_v17, %v265_v23 }
  0x5a   : > { %v269_v26 = vsub.f32 %v263_v21, %v267_v24 }
  0x5b   : > { %v287_v27 = vsel %vm285_vm0, %v268_v25, 0.0 }
  0x5c   : > { %v288_v28 = vsel %vm286_vm1, %v269_v26, 0.0 }
  0x5d   : > { %v298_v29 = vadd.f32 %v288_v28, %v287_v27 }
  0x5f   : > { %299 = vadd.xlane.f32.xlu0 %v298_v29 }
  0xec   : > { %v300_v30 = vpop.xlane.xlu0 %299 }
  0xed   : > { %v301_v31 = vrot.slane %v300_v30, 4 }
  0xef   : > { %v302_v32 = vadd.f32 %v301_v31, %v300_v30 }
  0xf1   : > { %v303_v33 = vrot.slane %v302_v32, 2 }
  0xf3   : > { %v304_v34 = vadd.f32 %v303_v33, %v302_v32 }
  0xf5   : > { %v305_v35 = vrot.slane %v304_v34, 1 }
  0xf7   : > { %v306_v36 = vadd.f32 %v305_v35, %v304_v34 }
  0xf9   : > { %436 = vpush %v306_v36 }
 0x12a   : > { %s437_s23 = spop %436 }
 0x12b   : > { %v308_v37 = vstv %s437_s23 }
 0x12c   : > { %309 = vst [vmem:[%s223_s18] sm:$0xff] %v308_v37 }
 0x12d   : > { %565 = shalt.err (!%p562_p1)
}
 0x12e   : > { %s566_s6 = scalar_lea.hbm %s787_s30, 128  ;;  %s570_s8 = scalar_lea.hbm %s840_s2, 256 }
 0x12f   : > { %p567_p2 = scmp.ne.s32.totalorder %s787_s30, %s566_s6  ;;  %p571_p7 = scmp.lt.u32.totalorder %s787_s30, %s840_s2 }
 0x130   : > { %p572_p6 = scmp.lt.u32.totalorder %s570_s8, %s566_s6  ;;  %p574_p8 = scmp.lt.u32.totalorder %s566_s6, %s787_s30 }
 0x131   : > { %p568_p3 = pnand %p567_p2, %p742_p12 }
 0x132   : > { %p573_p4 = por %p572_p6, %p571_p7 }
 0x133   : > { %p569_p5 = pneg %p568_p3 }
 0x134   : > { %p575_p9 = por %p574_p8, %p573_p4 }
 0x136   : > { %p576_p10 = pnand %p575_p9, %p569_p5 }
 0x138   : > { %579 = shalt.err (!%p576_p10)
}
 0x139   : > { %439 = dma.vmem_to_hbm [thread:$0]  (%p742_p12), %s782_s20, 128, %s787_s30, %s311_s28  }
 0x13a PF: > { %s336_s18 = sand.u32 1, %s629_s9   ;;  %p442_p11 = pnand %p417_p0, %p746_p13 }
 0x13b   : > { %s337_s22 = scalar_lea.sflag [#allocation5], %s336_s18 }
 0x13c   : > { %621 = dma.done.wait (!%p442_p11), %s337_s22, 128  }
 0x13d   : > { %623 = vsyncadd (!%p442_p11), %s337_s22, 4294967168  ;;  %s18_s16 = sadd.s32 1, %s657_s16   ;;  %s845_s9 = smov %s633_s10 }
 0x13e   : > { %p15_p1 = scmp.ge.s32.totalorder %s18_s16, 4   ;;  %s846_s10 = smov %s637_s11 }
 0x13f   : > { %s847_s11 = smov %s736_s24  ;;  %s848_s12 = smov %s645_s13 }
 0x140   : > { %s828_s13 = smov 0   ;;  %s849_s14 = smov %s653_s15 }
 0x141   : > { %s850_s15 = smov %s852_s19  ;;  %17 = sbr.rel (!%p15_p1) target bundleno = 7 (0x7), region = 84 }
 0x148   :  { %342 = vsyncpa [#allocation4], 1 }
 0x149   :  { %344 = vsyncpa [#allocation4 + $0x1], 1 }
 0x14a   :  { %345 = vsyncpa [#allocation5], 1 }
 0x14b   :  { %347 = vsyncpa [#allocation5 + $0x1], 1 }

</bundles_post_ra>
